<compile_context>
chip_gen: v6e
topology: v6e:2x2x1
jax: 0.10.0
libtpu: 0.0.40
codegen_flags: <defaults>
</compile_context>

<pallas_src>
import functools

import jax
import jax.numpy as jnp
from jax.experimental import pallas as pl
from jax.experimental.pallas import tpu as pltpu

EPS = 1e-5


def residual_block_kernel(x_ref, mask_ref, w1_ref, w2_ref, norm_ref, o_ref, *, W, B):
    S = x_ref.shape[-1]
    mask = mask_ref[...]                                  # (9*C_pad, S), DMA'd once
    w1 = w1_ref[...]                                      # (C_pad, 9*C_pad)
    w2 = w2_ref[...]
    g1, be1 = norm_ref[:, 0:1], norm_ref[:, 1:2]          # (C_pad, 1) each
    g2, be2 = norm_ref[:, 2:3], norm_ref[:, 3:4]

    def taps(a):
        # im2col: 9 lane-rolled copies (XLU slot) of the (C_pad, S) image,
        # concatenated along sublanes (8-aligned -> no relayout), boundary
        # zeroing via one precomputed-mask multiply.
        pieces = []
        for ky in range(3):
            for kx in range(3):
                d = (ky - 1) * W + (kx - 1)
                pieces.append(a if d == 0 else pltpu.roll(a, (-d) % S, axis=1))
        return jnp.concatenate(pieces, axis=0) * mask     # (9*C_pad, S)

    def inorm(a, g, be):
        # training-mode InstanceNorm: per-channel spatial stats, biased variance
        mean = jnp.mean(a, axis=1, keepdims=True)
        cen = a - mean
        var = jnp.mean(cen * cen, axis=1, keepdims=True)
        return cen * (jax.lax.rsqrt(var + EPS) * g) + be  # rsqrt*g folded at (C,1)

    for b in range(B):                                    # static unroll over images
        x = x_ref[b].astype(jnp.float32)                  # (C_pad, S), lanes = spatial

        # conv1 -> IN1 -> ReLU   (one MXU dot, K = 9*C_pad; conv bias cancelled by IN)
        y = jnp.dot(w1, taps(x), preferred_element_type=jnp.float32)
        y = jnp.maximum(inorm(y, g1, be1), 0.0)

        # conv2 -> IN2
        z = jnp.dot(w2, taps(y), preferred_element_type=jnp.float32)
        z = inorm(z, g2, be2)

        # residual add; lane-dense store (last dim S, multiple of 128)
        o_ref[b] = (z + x).astype(o_ref.dtype)


def _pack_weight(w, c_pad):
    # (C_out, C_in, 3, 3) -> (C_pad, 9*C_pad): tap-major (k = ky*3+kx),
    # channel-minor, zero rows/columns for the padded channels.
    c_out, c_in = w.shape[0], w.shape[1]
    wt = jnp.transpose(w, (0, 2, 3, 1)).reshape(c_out, 9, c_in)
    wt = jnp.pad(wt, ((0, c_pad - c_out), (0, 0), (0, c_pad - c_in)))
    return wt.reshape(c_pad, 9 * c_pad)


def _pad_c(v, c_pad):
    return jnp.pad(v, (0, c_pad - v.shape[0]))


def _boundary_mask(H, W, c_pad):
    # (9*c_pad, S) f32: rows k*c_pad..k*c_pad+c_pad-1 hold the validity mask of
    # tap k (zero where the 3x3 window falls outside the image).
    S = H * W
    idx = jnp.arange(S, dtype=jnp.int32)
    row, col = idx // W, idx % W
    pieces = []
    for ky in range(3):
        for kx in range(3):
            dy, dx = ky - 1, kx - 1
            v = ((row + dy >= 0) & (row + dy < H) &
                 (col + dx >= 0) & (col + dx < W)).astype(jnp.float32)
            pieces.append(jnp.broadcast_to(v[None, :], (c_pad, S)))
    return jnp.concatenate(pieces, axis=0)


def residual_block(x_nchw, w1, g1, be1, w2, g2, be2, *, images_per_step=None):
    # Conv biases intentionally not taken: they are exactly cancelled by the
    # following InstanceNorm mean-centering (no effect on the forward output).
    N, C, H, W = x_nchw.shape
    S = H * W
    C_pad = max(8, ((C + 7) // 8) * 8)

    if images_per_step is None:
        # grid length 2 keeps both v7x TensorCores busy; on single-TC v5e/v6e
        # pass images_per_step=N to fold the whole batch into one step.
        images_per_step = N // 2 if (N >= 2 and N % 2 == 0) else 1
    B = images_per_step
    assert N % B == 0, "batch must be divisible by images_per_step"

    x = x_nchw.reshape(N, C, S)                           # free reshape, no transpose
    x = jnp.pad(x, ((0, 0), (0, C_pad - C), (0, 0)))      # (N, C_pad, S)

    w1p = _pack_weight(w1, C_pad)
    w2p = _pack_weight(w2, C_pad)
    norm = jnp.stack([_pad_c(g1, C_pad), _pad_c(be1, C_pad),
                      _pad_c(g2, C_pad), _pad_c(be2, C_pad)], axis=1)   # (C_pad, 4)
    mask = _boundary_mask(H, W, C_pad)                    # (9*C_pad, S)

    img_spec = pl.BlockSpec((B, C_pad, S), lambda n: (n, 0, 0))
    def full_spec(shape):
        return pl.BlockSpec(shape, lambda n: (0, 0))

    out = pl.pallas_call(
        functools.partial(residual_block_kernel, W=W, B=B),
        out_shape=jax.ShapeDtypeStruct((N, C_pad, S), x_nchw.dtype),
        grid_spec=pltpu.PrefetchScalarGridSpec(
            num_scalar_prefetch=0,
            grid=(N // B,),
            in_specs=[
                img_spec,
                full_spec((9 * C_pad, S)),
                full_spec((C_pad, 9 * C_pad)),
                full_spec((C_pad, 9 * C_pad)),
                full_spec((C_pad, 4)),
            ],
            out_specs=img_spec,
        ),
        compiler_params=pltpu.CompilerParams(dimension_semantics=("parallel",)),
    )(x, mask, w1p, w2p, norm)
    return out[:, :C].reshape(N, C, H, W)


def _reference(x, w1, b1, g1, be1, w2, b2, g2, be2):
    # Pure-JAX reference matching the PyTorch module (NCHW), with conv biases.
    def conv(x, w, b):
        y = jax.lax.conv_general_dilated(
            x, w, (1, 1), ((1, 1), (1, 1)),
            dimension_numbers=("NCHW", "OIHW", "NCHW"))
        return y + b[None, :, None, None]

    def inorm(x, g, be):
        mean = x.mean(axis=(2, 3), keepdims=True)
        var = ((x - mean) ** 2).mean(axis=(2, 3), keepdims=True)
        return ((x - mean) * jax.lax.rsqrt(var + EPS)
                * g[None, :, None, None] + be[None, :, None, None])

    y = jnp.maximum(inorm(conv(x, w1, b1), g1, be1), 0.0)
    z = inorm(conv(y, w2, b2), g2, be2)
    return z + x


if __name__ == "__main__":
    N, C, H, W = 2, 4, 16, 16          # residual add requires c_in == c_out
    key = jax.random.PRNGKey(0)
    keys = jax.random.split(key, 5)

    x = jax.random.normal(keys[0], (N, C, H, W), jnp.float32)

    # deterministic synthetic parameters (PyTorch-like uniform conv init,
    # InstanceNorm affine: weight=1, bias=0). Conv biases only feed the
    # reference — they are mathematically cancelled by the InstanceNorms.
    bound = 1.0 / (C * 9) ** 0.5
    w1 = jax.random.uniform(keys[1], (C, C, 3, 3), jnp.float32, -bound, bound)
    b1 = jax.random.uniform(keys[2], (C,), jnp.float32, -bound, bound)
    w2 = jax.random.uniform(keys[3], (C, C, 3, 3), jnp.float32, -bound, bound)
    b2 = jax.random.uniform(keys[4], (C,), jnp.float32, -bound, bound)
    g1 = jnp.ones((C,), jnp.float32); be1 = jnp.zeros((C,), jnp.float32)
    g2 = jnp.ones((C,), jnp.float32); be2 = jnp.zeros((C,), jnp.float32)

    out = jax.block_until_ready(residual_block(x, w1, g1, be1, w2, g2, be2))
    ref = _reference(x, w1, b1, g1, be1, w2, b2, g2, be2)
    assert jnp.allclose(out, ref, atol=1e-4, rtol=1e-4), \
        float(jnp.max(jnp.abs(out - ref)))
    print("KERNEL_OK")
</pallas_src>

<mosaic_0001>
module attributes {stable_mosaic.version = 11 : i64} {
  func.func @residual_block_kernel(%arg0: i32, %arg1: memref<1x8x256xf32, #tpu.memory_space<vmem>>, %arg2: memref<72x256xf32, #tpu.memory_space<vmem>>, %arg3: memref<8x72xf32, #tpu.memory_space<vmem>>, %arg4: memref<8x72xf32, #tpu.memory_space<vmem>>, %arg5: memref<8x4xf32, #tpu.memory_space<vmem>>, %arg6: memref<1x8x256xf32, #tpu.memory_space<vmem>>) attributes {dimension_semantics = [#tpu.dimension_semantics<parallel>], iteration_bounds = array<i64: 2>, scalar_prefetch = 0 : i64, scratch_operands = 0 : i64, tpu.core_type = #tpu.core_type<tc>, window_params = [{transform_indices = @transform_0, window_bounds = array<i64: 1, 8, 256>}, {pipeline_mode = #tpu.pipeline_mode<synchronous>, transform_indices = @transform_1, window_bounds = array<i64: 72, 256>}, {pipeline_mode = #tpu.pipeline_mode<synchronous>, transform_indices = @transform_2, window_bounds = array<i64: 8, 72>}, {pipeline_mode = #tpu.pipeline_mode<synchronous>, transform_indices = @transform_3, window_bounds = array<i64: 8, 72>}, {pipeline_mode = #tpu.pipeline_mode<synchronous>, transform_indices = @transform_4, window_bounds = array<i64: 8, 4>}, {transform_indices = @transform_5, window_bounds = array<i64: 1, 8, 256>}]} {
    %c0 = arith.constant 0 : index
    %c0_0 = arith.constant 0 : index
    %0 = vector.load %arg2[%c0, %c0_0] : memref<72x256xf32, #tpu.memory_space<vmem>>, vector<72x256xf32>
    %c0_1 = arith.constant 0 : index
    %c0_2 = arith.constant 0 : index
    %1 = vector.load %arg3[%c0_1, %c0_2] : memref<8x72xf32, #tpu.memory_space<vmem>>, vector<8x72xf32>
    %c0_3 = arith.constant 0 : index
    %c0_4 = arith.constant 0 : index
    %2 = vector.load %arg4[%c0_3, %c0_4] : memref<8x72xf32, #tpu.memory_space<vmem>>, vector<8x72xf32>
    %c0_5 = arith.constant 0 : index
    %c0_6 = arith.constant 0 : index
    %3 = vector.load %arg5[%c0_5, %c0_6] : memref<8x4xf32, #tpu.memory_space<vmem>>, vector<8x1xf32>
    %c0_7 = arith.constant 0 : index
    %c1 = arith.constant 1 : index
    %4 = vector.load %arg5[%c0_7, %c1] : memref<8x4xf32, #tpu.memory_space<vmem>>, vector<8x1xf32>
    %c0_8 = arith.constant 0 : index
    %c2 = arith.constant 2 : index
    %5 = vector.load %arg5[%c0_8, %c2] : memref<8x4xf32, #tpu.memory_space<vmem>>, vector<8x1xf32>
    %c0_9 = arith.constant 0 : index
    %c3 = arith.constant 3 : index
    %6 = vector.load %arg5[%c0_9, %c3] : memref<8x4xf32, #tpu.memory_space<vmem>>, vector<8x1xf32>
    %c0_10 = arith.constant 0 : index
    %c0_11 = arith.constant 0 : index
    %c0_12 = arith.constant 0 : index
    %7 = vector.load %arg1[%c0_10, %c0_11, %c0_12] : memref<1x8x256xf32, #tpu.memory_space<vmem>>, vector<1x8x256xf32>
    %8 = vector.shape_cast %7 : vector<1x8x256xf32> to vector<8x256xf32>
    %c17_i32 = arith.constant 17 : i32
    %9 = tpu.dynamic_rotate %8 by %c17_i32 dim 1 : vector<8x256xf32>, i32 -> vector<8x256xf32>
    %c16_i32 = arith.constant 16 : i32
    %10 = tpu.dynamic_rotate %8 by %c16_i32 dim 1 : vector<8x256xf32>, i32 -> vector<8x256xf32>
    %c15_i32 = arith.constant 15 : i32
    %11 = tpu.dynamic_rotate %8 by %c15_i32 dim 1 : vector<8x256xf32>, i32 -> vector<8x256xf32>
    %c1_i32 = arith.constant 1 : i32
    %12 = tpu.dynamic_rotate %8 by %c1_i32 dim 1 : vector<8x256xf32>, i32 -> vector<8x256xf32>
    %c255_i32 = arith.constant 255 : i32
    %13 = tpu.dynamic_rotate %8 by %c255_i32 dim 1 : vector<8x256xf32>, i32 -> vector<8x256xf32>
    %c241_i32 = arith.constant 241 : i32
    %14 = tpu.dynamic_rotate %8 by %c241_i32 dim 1 : vector<8x256xf32>, i32 -> vector<8x256xf32>
    %c240_i32 = arith.constant 240 : i32
    %15 = tpu.dynamic_rotate %8 by %c240_i32 dim 1 : vector<8x256xf32>, i32 -> vector<8x256xf32>
    %c239_i32 = arith.constant 239 : i32
    %16 = tpu.dynamic_rotate %8 by %c239_i32 dim 1 : vector<8x256xf32>, i32 -> vector<8x256xf32>
    %17 = tpu.concatenate %9, %10, %11, %12, %8, %13, %14, %15, %16 in 0 : vector<8x256xf32>, vector<8x256xf32>, vector<8x256xf32>, vector<8x256xf32>, vector<8x256xf32>, vector<8x256xf32>, vector<8x256xf32>, vector<8x256xf32>, vector<8x256xf32> -> vector<72x256xf32>
    %18 = arith.mulf %17, %0 : vector<72x256xf32>
    %cst = arith.constant dense<0.000000e+00> : vector<8x256xf32>
    %19 = tpu.matmul %1, %18, %cst {dimension_numbers = #tpu.dot_dimension_numbers<[1], [0], [0], [1], [0, 0, 1, 1], [], []>} : vector<8x72xf32>, vector<72x256xf32>, vector<8x256xf32> -> vector<8x256xf32>
    %cst_13 = arith.constant dense<0.000000e+00> : vector<8xf32>
    %20 = vector.multi_reduction <add>, %19, %cst_13 [1] : vector<8x256xf32> to vector<8xf32>
    %21 = vector.shape_cast %20 : vector<8xf32> to vector<8x1xf32>
    %cst_14 = arith.constant 2.560000e+02 : f32
    %22 = vector.broadcast %cst_14 : f32 to vector<8x1xf32>
    %23 = arith.divf %21, %22 : vector<8x1xf32>
    %24 = vector.broadcast %23 : vector<8x1xf32> to vector<8x256xf32>
    %25 = arith.subf %19, %24 : vector<8x256xf32>
    %26 = arith.mulf %25, %25 : vector<8x256xf32>
    %cst_15 = arith.constant dense<0.000000e+00> : vector<8xf32>
    %27 = vector.multi_reduction <add>, %26, %cst_15 [1] : vector<8x256xf32> to vector<8xf32>
    %28 = vector.shape_cast %27 : vector<8xf32> to vector<8x1xf32>
    %cst_16 = arith.constant 2.560000e+02 : f32
    %29 = vector.broadcast %cst_16 : f32 to vector<8x1xf32>
    %30 = arith.divf %28, %29 : vector<8x1xf32>
    %cst_17 = arith.constant 9.99999974E-6 : f32
    %31 = vector.broadcast %cst_17 : f32 to vector<8x1xf32>
    %32 = arith.addf %30, %31 : vector<8x1xf32>
    %33 = math.rsqrt %32 : vector<8x1xf32>
    %34 = arith.mulf %33, %3 : vector<8x1xf32>
    %35 = vector.broadcast %34 : vector<8x1xf32> to vector<8x256xf32>
    %36 = arith.mulf %25, %35 : vector<8x256xf32>
    %37 = vector.broadcast %4 : vector<8x1xf32> to vector<8x256xf32>
    %38 = arith.addf %36, %37 : vector<8x256xf32>
    %cst_18 = arith.constant 0.000000e+00 : f32
    %39 = vector.broadcast %cst_18 : f32 to vector<8x256xf32>
    %40 = arith.maximumf %38, %39 : vector<8x256xf32>
    %c17_i32_19 = arith.constant 17 : i32
    %41 = tpu.dynamic_rotate %40 by %c17_i32_19 dim 1 : vector<8x256xf32>, i32 -> vector<8x256xf32>
    %c16_i32_20 = arith.constant 16 : i32
    %42 = tpu.dynamic_rotate %40 by %c16_i32_20 dim 1 : vector<8x256xf32>, i32 -> vector<8x256xf32>
    %c15_i32_21 = arith.constant 15 : i32
    %43 = tpu.dynamic_rotate %40 by %c15_i32_21 dim 1 : vector<8x256xf32>, i32 -> vector<8x256xf32>
    %c1_i32_22 = arith.constant 1 : i32
    %44 = tpu.dynamic_rotate %40 by %c1_i32_22 dim 1 : vector<8x256xf32>, i32 -> vector<8x256xf32>
    %c255_i32_23 = arith.constant 255 : i32
    %45 = tpu.dynamic_rotate %40 by %c255_i32_23 dim 1 : vector<8x256xf32>, i32 -> vector<8x256xf32>
    %c241_i32_24 = arith.constant 241 : i32
    %46 = tpu.dynamic_rotate %40 by %c241_i32_24 dim 1 : vector<8x256xf32>, i32 -> vector<8x256xf32>
    %c240_i32_25 = arith.constant 240 : i32
    %47 = tpu.dynamic_rotate %40 by %c240_i32_25 dim 1 : vector<8x256xf32>, i32 -> vector<8x256xf32>
    %c239_i32_26 = arith.constant 239 : i32
    %48 = tpu.dynamic_rotate %40 by %c239_i32_26 dim 1 : vector<8x256xf32>, i32 -> vector<8x256xf32>
    %49 = tpu.concatenate %41, %42, %43, %44, %40, %45, %46, %47, %48 in 0 : vector<8x256xf32>, vector<8x256xf32>, vector<8x256xf32>, vector<8x256xf32>, vector<8x256xf32>, vector<8x256xf32>, vector<8x256xf32>, vector<8x256xf32>, vector<8x256xf32> -> vector<72x256xf32>
    %50 = arith.mulf %49, %0 : vector<72x256xf32>
    %cst_27 = arith.constant dense<0.000000e+00> : vector<8x256xf32>
    %51 = tpu.matmul %2, %50, %cst_27 {dimension_numbers = #tpu.dot_dimension_numbers<[1], [0], [0], [1], [0, 0, 1, 1], [], []>} : vector<8x72xf32>, vector<72x256xf32>, vector<8x256xf32> -> vector<8x256xf32>
    %cst_28 = arith.constant dense<0.000000e+00> : vector<8xf32>
    %52 = vector.multi_reduction <add>, %51, %cst_28 [1] : vector<8x256xf32> to vector<8xf32>
    %53 = vector.shape_cast %52 : vector<8xf32> to vector<8x1xf32>
    %cst_29 = arith.constant 2.560000e+02 : f32
    %54 = vector.broadcast %cst_29 : f32 to vector<8x1xf32>
    %55 = arith.divf %53, %54 : vector<8x1xf32>
    %56 = vector.broadcast %55 : vector<8x1xf32> to vector<8x256xf32>
    %57 = arith.subf %51, %56 : vector<8x256xf32>
    %58 = arith.mulf %57, %57 : vector<8x256xf32>
    %cst_30 = arith.constant dense<0.000000e+00> : vector<8xf32>
    %59 = vector.multi_reduction <add>, %58, %cst_30 [1] : vector<8x256xf32> to vector<8xf32>
    %60 = vector.shape_cast %59 : vector<8xf32> to vector<8x1xf32>
    %cst_31 = arith.constant 2.560000e+02 : f32
    %61 = vector.broadcast %cst_31 : f32 to vector<8x1xf32>
    %62 = arith.divf %60, %61 : vector<8x1xf32>
    %cst_32 = arith.constant 9.99999974E-6 : f32
    %63 = vector.broadcast %cst_32 : f32 to vector<8x1xf32>
    %64 = arith.addf %62, %63 : vector<8x1xf32>
    %65 = math.rsqrt %64 : vector<8x1xf32>
    %66 = arith.mulf %65, %5 : vector<8x1xf32>
    %67 = vector.broadcast %66 : vector<8x1xf32> to vector<8x256xf32>
    %68 = arith.mulf %57, %67 : vector<8x256xf32>
    %69 = vector.broadcast %6 : vector<8x1xf32> to vector<8x256xf32>
    %70 = arith.addf %68, %69 : vector<8x256xf32>
    %71 = arith.addf %70, %8 : vector<8x256xf32>
    %c0_33 = arith.constant 0 : index
    %c0_34 = arith.constant 0 : index
    %c0_35 = arith.constant 0 : index
    %72 = vector.load %arg6[%c0_33, %c0_34, %c0_35] : memref<1x8x256xf32, #tpu.memory_space<vmem>>, vector<1x8x256xf32>
    %73 = vector.shape_cast %72 : vector<1x8x256xf32> to vector<8x256xf32>
    %74 = vector.shape_cast %71 : vector<8x256xf32> to vector<1x8x256xf32>
    tpu.vector_store %arg6[%c0_33, %c0_34, %c0_35], %74 {strides = array<i32>} : memref<1x8x256xf32, #tpu.memory_space<vmem>>, vector<1x8x256xf32>,
    return
  }
  func.func @transform_0(%arg0: i32) -> (i32, i32, i32) {
    %c0_i32 = arith.constant 0 : i32
    %c0_i32_0 = arith.constant 0 : i32
    %c0_i32_1 = arith.constant 0 : i32
    return %arg0, %c0_i32, %c0_i32_0 : i32, i32, i32
  }
  func.func @transform_1(%arg0: i32) -> (i32, i32) {
    %c0_i32 = arith.constant 0 : i32
    %c0_i32_0 = arith.constant 0 : i32
    %c0_i32_1 = arith.constant 0 : i32
    return %c0_i32, %c0_i32_0 : i32, i32
  }
  func.func @transform_2(%arg0: i32) -> (i32, i32) {
    %c0_i32 = arith.constant 0 : i32
    %c0_i32_0 = arith.constant 0 : i32
    %c0_i32_1 = arith.constant 0 : i32
    return %c0_i32, %c0_i32_0 : i32, i32
  }
  func.func @transform_3(%arg0: i32) -> (i32, i32) {
    %c0_i32 = arith.constant 0 : i32
    %c0_i32_0 = arith.constant 0 : i32
    %c0_i32_1 = arith.constant 0 : i32
    return %c0_i32, %c0_i32_0 : i32, i32
  }
  func.func @transform_4(%arg0: i32) -> (i32, i32) {
    %c0_i32 = arith.constant 0 : i32
    %c0_i32_0 = arith.constant 0 : i32
    %c0_i32_1 = arith.constant 0 : i32
    return %c0_i32, %c0_i32_0 : i32, i32
  }
  func.func @transform_5(%arg0: i32) -> (i32, i32, i32) {
    %c0_i32 = arith.constant 0 : i32
    %c0_i32_0 = arith.constant 0 : i32
    %c0_i32_1 = arith.constant 0 : i32
    return %arg0, %c0_i32, %c0_i32_0 : i32, i32, i32
  }
}

</mosaic_0001>

<bundles_post_ra>
// kernel: tpu_custom_call.1
= control target key start
LH: loop header
LB: loop body
LE: loop exit
PB: predicated region body
PF: predicated region fallthrough
CT: control target
= control target key end

     0   :  { %10 = vsyncpa [#allocation3], 0  ;;  %s1385_s0 = inlined_call_operand.hbm [shape: f32[2,8,256], index: 0, kind: input, shape index: {}]   ;;  %s1386_s1 = inlined_call_operand.hbm [shape: f32[72,256], index: 1, kind: input, shape index: {}]   ;;  %s1387_s2 = inlined_call_operand.vmem [shape: f32[8,72], index: 2, kind: input, shape index: {}]   ;;  %s1388_s3 = inlined_call_operand.vmem [shape: f32[8,72], index: 3, kind: input, shape index: {}]   ;;  %s1389_s4 = inlined_call_operand.vmem [shape: f32[8,4], index: 4, kind: input, shape index: {}]   ;;  %s1390_s5 = inlined_call_operand.hbm [shape: f32[2,8,256], index: 5, kind: output, shape index: {}]  }
   0x1   :  { %12 = vsyncpa [#allocation3 + $0x1], 0 }
   0x2   :  { %13 = vsyncpa [#allocation6], 0 }
   0x3   :  { %14 = vsyncpa [#allocation4], 0 }
   0x4   :  { %16 = vsyncpa [#allocation4 + $0x1], 0  ;;  %s1002_s18 = smov 0   ;;  %s1004_s19 = smov 0  }
   0x5   :  { %s1006_s20 = smov 0   ;;  %s1008_s21 = smov 0  }
   0x6 LB: > { %s1023_s22 = sadd.s32 4294967295, %s952_s21   ;;  %s729_s23 = sadd.s32 4294967294, %s952_s21   ;;  %s952_s21 = sphi %s1008_s21, %s1412_s21   ;;  %s948_s20 = sphi %s1006_s20, %s1411_s20   ;;  %s944_s19 = sphi %s1004_s19, %s1410_s19   ;;  %s940_s18 = sphi %s1002_s18, %s1409_s18  }
   0x7   : > { %p42_p0 = scmp.ne.s32.totalorder %s944_s19, %s940_s18  ;;  %p1391_p1 = scmp.eq.s32.totalorder %s1023_s22, 0 }
   0x8   : > { %p156_p3 = scmp.eq.s32.totalorder %s729_s23, 1  ;;  %p730_p5 = scmp.ge.s32.totalorder %s952_s21, 1 }
   0x9   : > { %p1032_p4 = por %p1391_p1, %p42_p0  ;;  %p163_p7 = scmp.lt.s32.totalorder %s952_s21, 3 }
   0xa   : > { %p1037_p6 = por %p156_p3, %p42_p0  ;;  %s954_s27 = smov [#allocation5]  }
   0xb   : > { %s1395_s24 = scalar_select %p1032_p4, 1, 0 }
   0xc   : > { %s1396_s25 = scalar_select %p1037_p6, 1, 0 }
   0xd   : > { %p1042_p8 = pnand %p730_p5, %p163_p7  ;;  %s175_s28 = sshll.u32 %s954_s27, 4  ;;  %s176_s28 = int_to_ptr.vmem [resolvable:$true] %s175_s28 }
   0xe   : > { %s1056_s30 = sadd.s32 1, %s952_s21   ;;  %s29_s6 = sadd.s32 1, %s948_s20 }
   0xf   : > { %s1397_s26 = scalar_select %p1042_p8, 1, 0 }
  0x10   : > { %p757_p9 = pneg %p1042_p8  ;;  %s26_s7 = ssub.s32 %s952_s21, %s1056_s30 }
  0x11   : > { %s841_s8 = scalar_lea.vmem %s176_s28, 2304  ;;  %p849_p5 = scmp.lt.s32.totalorder %s176_s28, %s176_s28 }
  0x12   : > { %p1051_p11 = pnand %p757_p9, %p1391_p1  ;;  %p842_p13 = scmp.ne.s32.totalorder %s176_s28, %s841_s8 }
  0x13   : > { %p850_p7 = scmp.lt.s32.totalorder %s841_s8, %s841_s8 }
  0x14   : > { %p832_p12 = pneg %p1051_p11 }
  0x15   : > { %p851_p10 = por %p850_p7, %p849_p5 }
  0x16   : > { %p844_p0 = pnand %p842_p13, %p832_p12 }
  0x18   : > { %p845_p3 = pneg %p844_p0 }
  0x1a   : > { %p852_p2 = pnand %p851_p10, %p845_p3 }
  0x1c   : > { %855 = shalt.err (!%p852_p2)
}
  0x1d   : > { %s955_s9 = smov 256   ;;  %s956_s10 = smov 16  }
  0x1e   : > { %760 = dma.hbm_to_vmem [thread:$0]  (!%p1051_p11), %s1386_s1, 2304, %s176_s28, [#allocation6], %s955_s9, %s955_s9, %s956_s10  }
  0x1f   : > { %p27_p9 = scmp.eq.s32.totalorder %s26_s7, 0  ;;  %p36_p12 = scmp.ne.s32.totalorder %s948_s20, %s944_s19 }
  0x20   : > { %p37_p10 = scmp.eq.s32.totalorder %s952_s21, 0  ;;  %p770_p2 = scmp.lt.s32.totalorder %s952_s21, 2 }
  0x21   : > { %s1073_s13 = scalar_select %p27_p9, %s948_s20, %s29_s6  }
  0x22   : > { %p38_p13 = por %p37_p10, %p36_p12  ;;  %p1399_p0 = scmp.eq.s32.totalorder %s1023_s22, 1 }
  0x23   : > { %s198_s15 = sand.u32 1, %s948_s20   ;;  %s747_s16 = sshll.u32 %s952_s21, 8 }
  0x24   : > { %p1077_p3 = por %p1399_p0, %p36_p12  ;;  %s733_s17 = sshll.u32 %s198_s15, 4 }
  0x25   : > { %s1086_s29 = scalar_lea.hbm %s1385_s0, %s747_s16  ;;  %s202_s28 = scalar_lea.vmem [#allocation2], %s733_s17 }
  0x26   : > { %s1400_s14 = scalar_select %p1077_p3, 1, 0 }
  0x27   : > { %s210_s6 = sshll.u32 %s202_s28, 4  ;;  %p1088_p11 = pnand %p770_p2, %p38_p13  ;;  %s211_s6 = int_to_ptr.vmem [resolvable:$true] %s210_s6 }
  0x28   : > { %s199_s8 = scalar_lea.sflag [#allocation3], %s198_s15  ;;  %s856_s9 = scalar_lea.hbm %s1086_s29, 256 }
  0x29   : > { %p857_p5 = scmp.ne.s32.totalorder %s1086_s29, %s856_s9  ;;  %p858_p7 = pneg %p1088_p11 }
  0x2a   : > { %s861_s12 = scalar_lea.hbm %s1385_s0, 512  ;;  %p862_p10 = scmp.lt.s32.totalorder %s1086_s29, %s1385_s0 }
  0x2b   : > { %p859_p9 = pnand %p858_p7, %p857_p5  ;;  %p863_p2 = scmp.lt.s32.totalorder %s861_s12, %s856_s9 }
  0x2d   : > { %p860_p12 = pneg %p859_p9  ;;  %p864_p13 = por %p863_p2, %p862_p10 }
  0x2f   : > { %p865_p0 = pnand %p864_p13, %p860_p12 }
  0x31   : > { %868 = shalt.err (!%p865_p0)
}
  0x32   : > { %s869_s23 = scalar_lea.vmem %s211_s6, 256  ;;  %s957_s15 = smov [#allocation2]  }
  0x33   : > { %p870_p1 = scmp.ne.s32.totalorder %s211_s6, %s869_s23  ;;  %s874_s27 = sshll.u32 %s957_s15, 4  ;;  %s875_s27 = int_to_ptr.vmem [resolvable:$false] %s874_s27 }
  0x34   : > { %s876_s28 = scalar_lea.vmem %s875_s27, 512  ;;  %p877_p5 = scmp.lt.s32.totalorder %s211_s6, %s875_s27 }
  0x35   : > { %p872_p6 = pnand %p870_p1, %p858_p7  ;;  %p878_p9 = scmp.lt.s32.totalorder %s876_s28, %s869_s23 }
  0x37   : > { %p873_p3 = pneg %p872_p6  ;;  %p879_p4 = por %p878_p9, %p877_p5 }
  0x39   : > { %p880_p8 = pnand %p879_p4, %p873_p3 }
  0x3b   : > { %883 = shalt.err (!%p880_p8)
}
  0x3c   : > { %764 = dma.hbm_to_vmem [thread:$0]  (!%p1088_p11), %s1086_s29, 256, %s211_s6, %s199_s8  }
  0x3d   : > { %p1402_p12 = scmp.ne.s32.totalorder %s1397_s26, 0 }
  0x3e   : > { %s1109_s9 = sand.u32 (!%p1402_p12), 1, %s944_s19   ;;  %p1403_p1 = scmp.ne.s32.totalorder (!%p1402_p12), %s1395_s24, 0 }
  0x3f   : > { %219 = sbr.rel (%p1402_p12) target bundleno = 1656 (0x678), region = 40  ;;  %s737_s10 = sshll.u32 (!%p1402_p12), %s1109_s9, 4 }
  0x40   : > { %s222_s11 = scalar_lea.sflag (!%p1402_p12), [#allocation3], %s1109_s9  ;;  %s225_s12 = scalar_lea.vmem (!%p1402_p12), [#allocation2], %s737_s10 }
  0x44   : > { %927 = dma.done.wait (%p1403_p1), %s222_s11, 256  }
  0x45   : > { %929 = vsyncadd (%p1403_p1), %s222_s11, 4294967040  ;;  %p1404_p4 = scmp.eq.s32.totalorder %s1023_s22, 0 }
  0x47   : > { %931 = dma.done.wait (%p1404_p4), [#allocation6], 2304   ;;  %p1405_p6 = pmov %p1404_p4 }
  0x48   : > { %v1123_v0 = vld [vmem:[%s225_s12] sm:$0xff]  ;;  %s958_s26 = smov 112   ;;  %s959_s29 = smov 111   ;;  %v1129_v1 = vld [vmem:[%s225_s12 + $0x8] sm:$0xff]  ;;  %v963_v2 = vmov 0.0   ;;  %v283_v3 = vlaneseq  ;;  %vm355_vm8 = vcmask 588800  }
  0x49   : > { %933 = vsyncadd (%p1405_p6), [#allocation6], 4294964992  ;;  %323 = vrot.lane.b32.xlu1 %v1123_v0, %s958_s26  ;;  %330 = vrot.lane.b32.xlu0 %v1123_v0, %s959_s29  ;;  %s960_s24 = smov 113   ;;  %s961_s6 = smov 127   ;;  %v1163_v7 = vld [vmem:[#allocation5 + $0x88] sm:$0xff]  ;;  %v1165_v8 = vld [vmem:[#allocation5 + $0x80] sm:$0xff] }
  0x4a   : > { %s962_s7 = smov 1   ;;  %423 = vmatprep.mubr.f32.mxu0 %v963_v2  ;;  %595 = vmatprep.mubr.f32.mxu1 %v963_v2  ;;  %s964_s8 = smov 15   ;;  %v1159_v4 = vand.u32 127, %v283_v3  ;;  %v1167_v11 = vld [vmem:[#allocation5 + $0x78] sm:$0xff]  ;;  %v1175_v15 = vld [vmem:[#allocation5 + $0x70] sm:$0xff]  ;;  %v1182_v19 = vld [vmem:[#allocation5 + $0x60] sm:$0xff] }
  0x4b   : > { %s965_s16 = smov 16   ;;  %s966_s17 = smov 17   ;;  %v1184_v20 = vld [vmem:[#allocation5 + $0x68] sm:$0xff]  ;;  %v1195_v29 = vld [vmem:[#allocation5 + $0x50] sm:$0xff]  ;;  %v1197_v30 = vld [vmem:[#allocation5 + $0x58] sm:$0xff] }
  0x4c   : > { %vm327_vm0 = vcmp.lt.s32.totalorder %v1159_v4, 112  ;;  %vm334_vm1 = vcmp.lt.s32.totalorder %v1159_v4, 111  ;;  %vm320_vm2 = vcmp.lt.s32.totalorder %v1159_v4, 113  ;;  %vm313_vm3 = vcmp.lt.s32.totalorder %v1159_v4, 127  ;;  %v1199_v31 = vld [vmem:[#allocation5 + $0x48] sm:$0xff]  ;;  %v1201_v34 = vld [vmem:[#allocation5 + $0x40] sm:$0xff] }
  0x4d   : > { %325 = vrot.lane.b32.xlu1 %v1129_v1, %s958_s26  ;;  %332 = vrot.lane.b32.xlu0 %v1129_v1, %s959_s29  ;;  %vm306_vm4 = vcmp.lt.s32.totalorder %v1159_v4, 1  ;;  %v346_v39 = vmul.f32 %v1129_v1, %v1199_v31  ;;  %v1212_v40 = vld [vmem:[#allocation5 + $0x30] sm:$0xff]  ;;  %v1214_v41 = vld [vmem:[#allocation5 + $0x38] sm:$0xff]  ;;  %v345_v42 = vmul.f32 %v1123_v0, %v1201_v34  ;;  %vm299_vm5 = vcmp.lt.s32.totalorder %v1159_v4, 15  ;;  %v1225_v49 = vld [vmem:[#allocation5 + $0x20] sm:$0xff]  ;;  %p1406_p3 = scmp.ne.s32.totalorder %s1400_s14, 0 }
  0x4e   : > { %v1227_v50 = vld [vmem:[#allocation5 + $0x28] sm:$0xff]  ;;  %vm292_vm6 = vcmp.lt.s32.totalorder %v1159_v4, 16  ;;  %v1236_v57 = vld [vmem:[#allocation5 + $0x10] sm:$0xff]  ;;  %v1238_v58 = vld [vmem:[#allocation5 + $0x18] sm:$0xff]  ;;  %vm285_vm7 = vcmp.lt.s32.totalorder %v1159_v4, 17 }
  0x4f   : > { %v1247_v3 = vld [vmem:[#allocation5] sm:$0xff] }
  0x51   : > { %318 = vrot.lane.b32.xlu1 %v1129_v1, %s960_s24  ;;  %316 = vrot.lane.b32.xlu0 %v1123_v0, %s960_s24 }
  0x55   : > { %311 = vrot.lane.b32.xlu1 %v1129_v1, %s961_s6  ;;  %309 = vrot.lane.b32.xlu0 %v1123_v0, %s961_s6 }
  0x59   : > { %304 = vrot.lane.b32.xlu1 %v1129_v1, %s962_s7  ;;  %302 = vrot.lane.b32.xlu0 %v1123_v0, %s962_s7 }
  0x5d   : > { %297 = vrot.lane.b32.xlu1 %v1129_v1, %s964_s8  ;;  %295 = vrot.lane.b32.xlu0 %v1123_v0, %s964_s8 }
  0x61   : > { %290 = vrot.lane.b32.xlu1 %v1129_v1, %s965_s16  ;;  %288 = vrot.lane.b32.xlu0 %v1123_v0, %s965_s16 }
  0x65   : > { %281 = vrot.lane.b32.xlu1 %v1129_v1, %s966_s17  ;;  %279 = vrot.lane.b32.xlu0 %v1123_v0, %s966_s17 }
  0xbb   : > { %v324_v5 = vpop.permute.xlu1 %323  ;;  %v331_v6 = vpop.permute.xlu0 %330 }
  0xbf   : > { %v326_v9 = vpop.permute.xlu1 %325  ;;  %v333_v10 = vpop.permute.xlu0 %332 }
  0xc0   : > { %v329_v12 = vsel %vm327_vm0, %v326_v9, %v324_v5  ;;  %v335_v13 = vsel %vm334_vm1, %v331_v6, %v333_v10  ;;  %v336_v14 = vsel %vm334_vm1, %v333_v10, %v331_v6  ;;  %v328_v16 = vsel %vm327_vm0, %v324_v5, %v326_v9  ;;  %v1249_v5 = vld [vmem:[#allocation5 + $0x8] sm:$0xff] }
  0xc1   : > { %v354_v17 = vmul.f32 %v336_v14, %v1163_v7  ;;  %v353_v18 = vmul.f32 %v335_v13, %v1165_v8  ;;  %v352_v21 = vmul.f32 %v329_v12, %v1167_v11  ;;  %v351_v24 = vmul.f32 %v328_v16, %v1175_v15  ;;  %v274_v16 = vld [vmem:[%s1387_s2] sm:$0xff] }
  0xc3   : > { %v319_v22 = vpop.permute.xlu1 %318  ;;  %v317_v23 = vpop.permute.xlu0 %316  ;;  %373 = vmatprep.subr.mxu0 %v354_v17 }
  0xc4   : > { %v321_v25 = vsel %vm320_vm2, %v317_v23, %v319_v22  ;;  %v322_v26 = vsel %vm320_vm2, %v319_v22, %v317_v23  ;;  %374 = vmatpush1.msra.mxu0 %v353_v18 }
  0xc5   : > { %v349_v27 = vmul.f32 %v321_v25, %v1182_v19  ;;  %v350_v28 = vmul.f32 %v322_v26, %v1184_v20  ;;  %375 = vmatprep.subr.mxu0 %v352_v21 }
  0xc6   : > { %376 = vmatpush1.msra.mxu0 %v351_v24 }
  0xc7   : > { %v312_v32 = vpop.permute.xlu1 %311  ;;  %v310_v33 = vpop.permute.xlu0 %309  ;;  %377 = vmatprep.subr.mxu0 %v350_v28 }
  0xc8   : > { %v314_v35 = vsel %vm313_vm3, %v310_v33, %v312_v32  ;;  %v315_v36 = vsel %vm313_vm3, %v312_v32, %v310_v33  ;;  %378 = vmatpush1.msra.mxu0 %v349_v27  ;;  %v967_v32 = vmov 0   ;;  %v1264_v33 = vld [vmem:[%s1389_s4] sm:$0xff] }
  0xc9   : > { %v347_v37 = vmul.f32 %v314_v35, %v1195_v29  ;;  %v348_v38 = vmul.f32 %v315_v36, %v1197_v30  ;;  %821 = vset.pattern.permute.xlu0 %v967_v32  ;;  %v968_v35 = vmov 1  }
  0xca   : > { %822 = vset.pattern.permute.xlu1 %v968_v35 }
  0xcb   : > { %v305_v43 = vpop.permute.xlu1 %304  ;;  %v303_v44 = vpop.permute.xlu0 %302  ;;  %379 = vmatprep.subr.mxu0 %v348_v38 }
  0xcc   : > { %v307_v45 = vsel %vm306_vm4, %v303_v44, %v305_v43  ;;  %v308_v46 = vsel %vm306_vm4, %v305_v43, %v303_v44  ;;  %380 = vmatpush1.msra.mxu0 %v347_v37 }
  0xcd   : > { %v343_v47 = vmul.f32 %v308_v46, %v1212_v40  ;;  %v344_v48 = vmul.f32 %v307_v45, %v1214_v41  ;;  %381 = vmatprep.subr.mxu0 %v346_v39 }
  0xce   : > { %382 = vmatpush1.msra.mxu0 %v345_v42 }
  0xcf   : > { %v298_v51 = vpop.permute.xlu1 %297  ;;  %v296_v52 = vpop.permute.xlu0 %295  ;;  %383 = vmatprep.subr.mxu0 %v344_v48 }
  0xd0   : > { %v300_v53 = vsel %vm299_vm5, %v296_v52, %v298_v51  ;;  %v301_v54 = vsel %vm299_vm5, %v298_v51, %v296_v52  ;;  %384 = vmatpush1.msra.mxu0 %v343_v47 }
  0xd1   : > { %v341_v55 = vmul.f32 %v301_v54, %v1225_v49  ;;  %v342_v56 = vmul.f32 %v300_v53, %v1227_v50 }
  0xd3   : > { %v291_v59 = vpop.permute.xlu1 %290  ;;  %v289_v60 = vpop.permute.xlu0 %288  ;;  %385 = vmatprep.subr.mxu0 %v342_v56 }
  0xd4   : > { %v293_v61 = vsel %vm292_vm6, %v289_v60, %v291_v59  ;;  %v294_v62 = vsel %vm292_vm6, %v291_v59, %v289_v60  ;;  %386 = vmatpush1.msra.mxu0 %v341_v55 }
  0xd5   : > { %v339_v63 = vmul.f32 %v294_v62, %v1236_v57  ;;  %v340_v2 = vmul.f32 %v293_v61, %v1238_v58 }
  0xd7   : > { %v282_v6 = vpop.permute.xlu1 %281  ;;  %v280_v9 = vpop.permute.xlu0 %279  ;;  %387 = vmatprep.subr.mxu0 %v340_v2 }
  0xd8   : > { %v286_v10 = vsel %vm285_vm7, %v280_v9, %v282_v6  ;;  %v287_v12 = vsel %vm285_vm7, %v282_v6, %v280_v9  ;;  %388 = vmatpush1.msra.mxu0 %v339_v63 }
  0xd9   : > { %v337_v13 = vmul.f32 %v287_v12, %v1247_v3  ;;  %v338_v14 = vmul.f32 %v286_v10, %v1249_v5 }
  0xdb   : > { %389 = vmatprep.subr.mxu0 %v338_v14 }
  0xdc   : > { %390 = vmatpush1.msra.mxu0 %v337_v13 }
  0xdd   : > { %740 = vmatmul.mubr.msk.f32.vlgmr.msra.gmra.mxu0 %vm355_vm8, %v274_v16 }
 0x19d   : > { %v425_v17 = vpop.f32.mrf.mxu0 }
 0x19f   : > { %v427_v18 = vpop.f32.mrf.mxu0 }
 0x1a0   : > { %v430_v21 = vadd.f32 %v427_v18, %v425_v17 }
 0x1a2   : > { %431 = vadd.xlane.f32.xlu0 %v430_v21 }
 0x22b   : > { %v432_v22 = vpop.xlane.xlu0 %431 }
 0x22c   : > { %v434_v23 = vmul.f32 0.00390625, %v432_v22 }
 0x22e   : > { %v435_v24 = vsub.f32 %v425_v17, %v434_v23  ;;  %v436_v25 = vsub.f32 %v427_v18, %v434_v23 }
 0x230   : > { %v437_v26 = vmul.f32 %v435_v24, %v435_v24  ;;  %v438_v27 = vmul.f32 %v436_v25, %v436_v25 }
 0x232   : > { %v439_v28 = vadd.f32 %v438_v27, %v437_v26 }
 0x234   : > { %440 = vadd.xlane.f32.xlu1 %v439_v28 }
 0x245   : > { %455 = vperm.xlu1 %822, %v1264_v33  }
 0x2bd   : > { %v441_v36 = vpop.xlane.xlu1 %440 }
 0x2be   : > { %v442_v37 = vmul.f32 0.00390625, %v441_v36 }
 0x2c0   : > { %v443_v38 = vadd.f32 1e-05, %v442_v37 }
 0x2c1   : > { %v456_v44 = vpop.permute.xlu1 %455 }
 0x2c2   : > { %826 = vrsqrt.f32 %v443_v38 }
 0x2cf   : > { %v827_v39 = vpop.eup %826 }
 0x2d0   : > { %v445_v42 = vmul.f32 %v827_v39, %v1264_v33 }
 0x2d2   : > { %448 = vperm.xlu0 %821, %v445_v42  }
 0x34d   : > { %v449_v43 = vpop.permute.xlu0 %448 }
 0x34e   : > { %v451_v45 = vmul.f32 %v449_v43, %v435_v24  ;;  %v452_v46 = vmul.f32 %v449_v43, %v436_v25 }
 0x350   : > { %v458_v47 = vadd.f32 %v456_v44, %v451_v45  ;;  %v459_v48 = vadd.f32 %v456_v44, %v452_v46 }
 0x352   : > { %v460_v51 = vmax.f32 %v458_v47, 0.0  ;;  %v461_v52 = vmax.f32 %v459_v48, 0.0 }
 0x354   : > { %486 = vrot.lane.b32.xlu0 %v460_v51, %s961_s6  ;;  %504 = vrot.lane.b32.xlu1 %v460_v51, %s959_s29  ;;  %v518_v26 = vmul.f32 %v460_v51, %v1201_v34 }
 0x358   : > { %480 = vrot.lane.b32.xlu0 %v460_v51, %s962_s7  ;;  %506 = vrot.lane.b32.xlu1 %v461_v52, %s959_s29  ;;  %s255_s29 = scalar_lea.vmem [#allocation7], %s737_s10 }
 0x35c   : > { %474 = vrot.lane.b32.xlu0 %v460_v51, %s964_s8  ;;  %498 = vrot.lane.b32.xlu1 %v460_v51, %s958_s26 }
 0x360   : > { %468 = vrot.lane.b32.xlu0 %v460_v51, %s965_s16  ;;  %500 = vrot.lane.b32.xlu1 %v461_v52, %s958_s26  ;;  %s748_s26 = sshll.u32 %s1023_s22, 8  ;;  %s971_s22 = smov [#allocation7]  }
 0x361   : > { %s888_s10 = sshll.u32 %s971_s22, 4  ;;  %s889_s10 = int_to_ptr.vmem [resolvable:$false] %s888_s10 }
 0x362   : > { %s890_s23 = scalar_lea.vmem %s889_s10, 512 }
 0x364   : > { %462 = vrot.lane.b32.xlu0 %v460_v51, %s966_s17  ;;  %492 = vrot.lane.b32.xlu1 %v460_v51, %s960_s24 }
 0x368   : > { %494 = vrot.lane.b32.xlu1 %v461_v52, %s960_s24  ;;  %s649_s24 = sshll.u32 %s255_s29, 4  ;;  %s650_s24 = int_to_ptr.vmem [resolvable:$true] %s649_s24 }
 0x369   : > { %p891_p10 = scmp.lt.s32.totalorder %s650_s24, %s889_s10 }
 0x36c   : > { %488 = vrot.lane.b32.xlu1 %v461_v52, %s961_s6 }
 0x370   : > { %482 = vrot.lane.b32.xlu1 %v461_v52, %s962_s7 }
 0x374   : > { %476 = vrot.lane.b32.xlu1 %v461_v52, %s964_s8  ;;  %s1348_s8 = scalar_lea.hbm %s1390_s5, %s748_s26 }
 0x378   : > { %470 = vrot.lane.b32.xlu1 %v461_v52, %s965_s16  ;;  %s635_s16 = scalar_lea.sflag [#allocation4], %s1109_s9 }
 0x37c   : > { %464 = vrot.lane.b32.xlu1 %v461_v52, %s966_s17  ;;  %s884_s17 = scalar_lea.vmem %s650_s24, 256 }
 0x37d   : > { %p885_p8 = scmp.ne.s32.totalorder %s650_s24, %s884_s17  ;;  %p892_p2 = scmp.lt.s32.totalorder %s890_s23, %s884_s17 }
 0x37f   : > { %p886_p11 = pnand %p885_p8, %p1406_p3  ;;  %p893_p13 = por %p892_p2, %p891_p10 }
 0x381   : > { %p887_p7 = pneg %p886_p11 }
 0x383   : > { %p894_p0 = pnand %p893_p13, %p887_p7 }
 0x3c6   : > { %v505_v53 = vpop.permute.xlu1 %504  ;;  %v487_v10 = vpop.permute.xlu0 %486 }
 0x3ca   : > { %v507_v54 = vpop.permute.xlu1 %506  ;;  %v481_v14 = vpop.permute.xlu0 %480 }
 0x3cb   : > { %v508_v55 = vsel %vm334_vm1, %v505_v53, %v507_v54  ;;  %v509_v56 = vsel %vm334_vm1, %v507_v54, %v505_v53  ;;  %v970_v54 = vmov 3  }
 0x3cc   : > { %v527_v59 = vmul.f32 %v509_v56, %v1163_v7  ;;  %v526_v60 = vmul.f32 %v508_v55, %v1165_v8  ;;  %824 = vset.pattern.permute.xlu1 %v970_v54 }
 0x3ce   : > { %545 = vmatprep.subr.mxu1 %v527_v59  ;;  %v499_v61 = vpop.permute.xlu1 %498  ;;  %v475_v23 = vpop.permute.xlu0 %474 }
 0x3cf   : > { %546 = vmatpush1.msra.mxu1 %v526_v60 }
 0x3d2   : > { %v501_v62 = vpop.permute.xlu1 %500  ;;  %v469_v32 = vpop.permute.xlu0 %468 }
 0x3d3   : > { %v502_v63 = vsel %vm327_vm0, %v499_v61, %v501_v62  ;;  %v503_v2 = vsel %vm327_vm0, %v501_v62, %v499_v61 }
 0x3d4   : > { %v524_v6 = vmul.f32 %v502_v63, %v1175_v15  ;;  %v525_v9 = vmul.f32 %v503_v2, %v1167_v11 }
 0x3d6   : > { %547 = vmatprep.subr.mxu1 %v525_v9  ;;  %v493_v12 = vpop.permute.xlu1 %492  ;;  %v463_v39 = vpop.permute.xlu0 %462 }
 0x3d7   : > { %548 = vmatpush1.msra.mxu1 %v524_v6 }
 0x3da   : > { %v495_v7 = vpop.permute.xlu1 %494 }
 0x3db   : > { %v496_v8 = vsel %vm320_vm2, %v493_v12, %v495_v7  ;;  %v497_v13 = vsel %vm320_vm2, %v495_v7, %v493_v12 }
 0x3dc   : > { %v522_v16 = vmul.f32 %v496_v8, %v1182_v19  ;;  %v523_v17 = vmul.f32 %v497_v13, %v1184_v20  ;;  %v519_v19 = vmul.f32 %v461_v52, %v1199_v31 }
 0x3de   : > { %549 = vmatprep.subr.mxu1 %v523_v17  ;;  %v489_v15 = vpop.permute.xlu1 %488 }
 0x3df   : > { %v490_v11 = vsel %vm313_vm3, %v487_v10, %v489_v15  ;;  %v491_v18 = vsel %vm313_vm3, %v489_v15, %v487_v10  ;;  %550 = vmatpush1.msra.mxu1 %v522_v16 }
 0x3e0   : > { %v520_v21 = vmul.f32 %v490_v11, %v1195_v29  ;;  %v521_v22 = vmul.f32 %v491_v18, %v1197_v30 }
 0x3e2   : > { %551 = vmatprep.subr.mxu1 %v521_v22  ;;  %v483_v24 = vpop.permute.xlu1 %482 }
 0x3e3   : > { %v484_v20 = vsel %vm306_vm4, %v481_v14, %v483_v24  ;;  %v485_v25 = vsel %vm306_vm4, %v483_v24, %v481_v14  ;;  %552 = vmatpush1.msra.mxu1 %v520_v21 }
 0x3e4   : > { %v516_v27 = vmul.f32 %v485_v25, %v1212_v40  ;;  %v517_v29 = vmul.f32 %v484_v20, %v1214_v41  ;;  %553 = vmatprep.subr.mxu1 %v519_v19 }
 0x3e5   : > { %554 = vmatpush1.msra.mxu1 %v518_v26 }
 0x3e6   : > { %v477_v30 = vpop.permute.xlu1 %476  ;;  %555 = vmatprep.subr.mxu1 %v517_v29 }
 0x3e7   : > { %v478_v31 = vsel %vm299_vm5, %v475_v23, %v477_v30  ;;  %v479_v28 = vsel %vm299_vm5, %v477_v30, %v475_v23  ;;  %556 = vmatpush1.msra.mxu1 %v516_v27 }
 0x3e8   : > { %v514_v35 = vmul.f32 %v479_v28, %v1225_v49  ;;  %v515_v34 = vmul.f32 %v478_v31, %v1227_v50 }
 0x3ea   : > { %v471_v36 = vpop.permute.xlu1 %470  ;;  %557 = vmatprep.subr.mxu1 %v515_v34 }
 0x3eb   : > { %v472_v40 = vsel %vm292_vm6, %v469_v32, %v471_v36  ;;  %v473_v41 = vsel %vm292_vm6, %v471_v36, %v469_v32  ;;  %558 = vmatpush1.msra.mxu1 %v514_v35 }
 0x3ec   : > { %v512_v37 = vmul.f32 %v473_v41, %v1236_v57  ;;  %v513_v38 = vmul.f32 %v472_v40, %v1238_v58  ;;  %v275_v57 = vld [vmem:[%s1388_s3] sm:$0xff] }
 0x3ee   : > { %v465_v42 = vpop.permute.xlu1 %464  ;;  %559 = vmatprep.subr.mxu1 %v513_v38 }
 0x3ef   : > { %v466_v49 = vsel %vm285_vm7, %v463_v39, %v465_v42  ;;  %v467_v50 = vsel %vm285_vm7, %v465_v42, %v463_v39  ;;  %560 = vmatpush1.msra.mxu1 %v512_v37 }
 0x3f0   : > { %v510_v43 = vmul.f32 %v467_v50, %v1247_v3  ;;  %v511_v44 = vmul.f32 %v466_v49, %v1249_v5  ;;  %v969_v5 = vmov 2  }
 0x3f1   : > { %823 = vset.pattern.permute.xlu0 %v969_v5 }
 0x3f2   : > { %561 = vmatprep.subr.mxu1 %v511_v44 }
 0x3f3   : > { %562 = vmatpush1.msra.mxu1 %v510_v43 }
 0x3f4   : > { %741 = vmatmul.mubr.msk.f32.vlgmr.msra.gmra.mxu1 %vm355_vm8, %v275_v57 }
 0x4b4   : > { %v597_v58 = vpop.f32.mrf.mxu1 }
 0x4b6   : > { %v599_v45 = vpop.f32.mrf.mxu1 }
 0x4b7   : > { %v602_v46 = vadd.f32 %v599_v45, %v597_v58 }
 0x4b9   : > { %603 = vadd.xlane.f32.xlu0 %v602_v46 }
 0x542   : > { %v604_v47 = vpop.xlane.xlu0 %603 }
 0x543   : > { %v605_v4 = vmul.f32 0.00390625, %v604_v47 }
 0x545   : > { %v606_v48 = vsub.f32 %v597_v58, %v605_v4  ;;  %v607_v51 = vsub.f32 %v599_v45, %v605_v4 }
 0x547   : > { %v608_v52 = vmul.f32 %v606_v48, %v606_v48  ;;  %v609_v3 = vmul.f32 %v607_v51, %v607_v51 }
 0x549   : > { %v610_v53 = vadd.f32 %v609_v3, %v608_v52 }
 0x54b   : > { %611 = vadd.xlane.f32.xlu1 %v610_v53 }
 0x55c   : > { %625 = vperm.xlu1 %824, %v1264_v33  }
 0x5d4   : > { %v612_v55 = vpop.xlane.xlu1 %611 }
 0x5d5   : > { %v613_v56 = vmul.f32 0.00390625, %v612_v55 }
 0x5d7   : > { %v614_v59 = vadd.f32 1e-05, %v613_v56 }
 0x5d8   : > { %v626_v63 = vpop.permute.xlu1 %625 }
 0x5d9   : > { %828 = vrsqrt.f32 %v614_v59 }
 0x5e6   : > { %v829_v60 = vpop.eup %828 }
 0x5e7   : > { %v616_v61 = vmul.f32 %v829_v60, %v1264_v33 }
 0x5e9   : > { %619 = vperm.xlu0 %823, %v616_v61  }
 0x5ed   : > { %825 = vset.pattern.permute.xlu0 %v970_v54 }
 0x664   : > { %v620_v62 = vpop.permute.xlu0 %619 }
 0x665   : > { %v622_v2 = vmul.f32 %v620_v62, %v606_v48  ;;  %v623_v6 = vmul.f32 %v620_v62, %v607_v51 }
 0x667   : > { %v628_v9 = vadd.f32 %v626_v63, %v622_v2  ;;  %v629_v10 = vadd.f32 %v626_v63, %v623_v6 }
 0x669   : > { %v630_v12 = vadd.f32 %v628_v9, %v1123_v0  ;;  %v631_v7 = vadd.f32 %v629_v10, %v1129_v1 }
 0x66b   : > { %632 = vst [vmem:[%s255_s29] sm:$0xff] %v630_v12  ;;  %633 = vst [vmem:[%s255_s29 + $0x8] sm:$0xff] %v631_v7 }
 0x66c   : > { %897 = shalt.err (!%p894_p0)
}
 0x66d   : > { %s898_s15 = scalar_lea.hbm %s1348_s8, 256  ;;  %s902_s28 = scalar_lea.hbm %s1390_s5, 512 }
 0x66e   : > { %p899_p5 = scmp.ne.s32.totalorder %s1348_s8, %s898_s15  ;;  %p903_p1 = scmp.lt.s32.totalorder %s1348_s8, %s1390_s5 }
 0x66f   : > { %p904_p4 = scmp.lt.s32.totalorder %s902_s28, %s898_s15 }
 0x670   : > { %p900_p9 = pnand %p899_p5, %p1406_p3 }
 0x671   : > { %p905_p6 = por %p904_p4, %p903_p1 }
 0x672   : > { %p901_p12 = pneg %p900_p9 }
 0x674   : > { %p906_p8 = pnand %p905_p6, %p901_p12 }
 0x676   : > { %909 = shalt.err (!%p906_p8)
}
 0x677   : > { %755 = dma.vmem_to_hbm [thread:$0]  (%p1406_p3), %s650_s24, 256, %s1348_s8, %s635_s16  }
 0x678 PF: > { %s661_s26 = sand.u32 1, %s940_s18   ;;  %p1407_p11 = scmp.ne.s32.totalorder %s1396_s25, 0 }
 0x679   : > { %p1408_p7 = scmp.ge.s32.totalorder %s952_s21, 2  ;;  %s662_s29 = scalar_lea.sflag [#allocation4], %s661_s26 }
 0x67b   : > { %p766_p10 = pnand %p1408_p7, %p1407_p11 }
 0x67d   : > { %p767_p2 = pneg %p766_p10 }
 0x67f   : > { %935 = dma.done.wait (%p767_p2), %s662_s29, 256  }
 0x680   : > { %937 = vsyncadd (%p767_p2), %s662_s29, 4294967040  ;;  %p19_p13 = scmp.ge.s32.totalorder %s1056_s30, 4   ;;  %s1409_s18 = smov %s944_s19 }
 0x681   : > { %s1410_s19 = smov %s948_s20  ;;  %s1411_s20 = smov %s1073_s13 }
 0x682   : > { %s1412_s21 = smov %s1056_s30  ;;  %21 = sbr.rel (!%p19_p13) target bundleno = 6 (0x6), region = 89 }
 0x687   :  { %667 = vsyncpa [#allocation3], 1 }
 0x688   :  { %669 = vsyncpa [#allocation3 + $0x1], 1 }
 0x689   :  { %670 = vsyncpa [#allocation6], 1 }
 0x68a   :  { %671 = vsyncpa [#allocation4], 1 }
 0x68b   :  { %673 = vsyncpa [#allocation4 + $0x1], 1 }

</bundles_post_ra>
